<compile_context>
chip_gen: v7x
topology: tpu7x:2x2x1
jax: 0.10.0
libtpu: 0.0.40
codegen_flags: <defaults>
</compile_context>

<pallas_src>
import jax
import jax.numpy as jnp
from jax.experimental import pallas as pl
from jax.experimental.pallas import tpu as pltpu

K_THRESHOLD = 100.0  # torch.tensor(100) broadcast against float X -> float compare


def _ssparse_kernel(x_ref, o_ref, acc_ref):
    """x_ref: (bc, *out_block) input chunk; o_ref/acc_ref: output-shaped block.

    Grid axis 0: independent output tiles ("parallel").
    Grid axis 1: batch chunks ("arbitrary") -> acc_ref is the resident
    accumulator; o_ref is written only on the last batch chunk.
    """
    jb = pl.program_id(1)

    @pl.when(jb == 0)
    def _():
        acc_ref[...] = jnp.zeros_like(acc_ref)

    xs = x_ref[...].astype(jnp.float32)          # f32 accumulation for all dtypes
    acc_ref[...] += jnp.sum(xs, axis=0, keepdims=(xs.ndim == acc_ref.ndim))

    @pl.when(jb == pl.num_programs(1) - 1)
    def _():
        s = acc_ref[...]
        o_ref[...] = jnp.where(s < K_THRESHOLD, jnp.zeros_like(s), s).astype(o_ref.dtype)


def _round_up(x, m):
    return (x + m - 1) // m * m


def _largest_divisor_le(n, cap):
    for d in range(min(cap, n), 0, -1):
        if n % d == 0:
            return d
    return 1


def _gen_params():
    """Per-TPU-generation tiling budget, scoped-VMEM limit and min grid steps."""
    vmem_cap = 64 << 20  # conservative default (v7x per-TC size) if query fails
    try:
        info = pltpu.get_tpu_info()
        vmem_cap = int(getattr(info, "vmem_capacity_bytes", vmem_cap))
    except Exception:
        pass
    if vmem_cap <= (96 << 20):
        # v7x-class: 64 MiB/TC, 2 TensorCores split the "parallel" grid axis.
        return dict(vmem_budget=20 << 20, vmem_limit=48 << 20, min_steps=8)
    # v5e / v6e: 128 MiB VMEM, single TensorCore -> bigger blocks, fewer steps.
    return dict(vmem_budget=64 << 20, vmem_limit=96 << 20, min_steps=3)


def _pick_tile(total, per_unit_bytes, budget, min_steps, align):
    """Largest `align`-multiple tile within the VMEM budget, preferring at
    least `min_steps` grid steps when `total` is large enough to split."""
    cap = max(align, (budget // max(per_unit_bytes, 1)) // align * align)
    tile = min(cap, _round_up(total, align))
    want = min(min_steps, pl.cdiv(total, align))
    if want > 1:
        tile = min(tile, _round_up(pl.cdiv(total, want), align))
    return max(align, tile)


def _ssparse_rows128(x3d, *, vmem_budget, vmem_limit, min_steps):
    """x3d: (B, rows, 128) -> (rows, 128) = threshold(sum over B)."""
    B, rows, _ = x3d.shape
    isz = x3d.dtype.itemsize
    bc = _largest_divisor_le(B, 8)            # batch chunk per block (exact divisor)
    nb = B // bc
    sub_align = 8 * max(1, 4 // isz)          # dense sublane packing for narrow dtypes
    # Per tile row: double-buffered input chunk + double-buffered output + f32 acc.
    per_row = 128 * (2 * bc * isz + 2 * isz + 4)
    rt = _pick_tile(rows, per_row, vmem_budget, min_steps, sub_align)
    gi = pl.cdiv(rows, rt)

    cost = pl.CostEstimate(
        flops=B * rows * 128,
        transcendentals=0,
        bytes_accessed=(B + 1) * rows * 128 * isz,
    )

    return pl.pallas_call(
        _ssparse_kernel,
        out_shape=jax.ShapeDtypeStruct((rows, 128), x3d.dtype),
        grid_spec=pltpu.PrefetchScalarGridSpec(
            num_scalar_prefetch=0,
            grid=(gi, nb),
            in_specs=[pl.BlockSpec((bc, rt, 128), lambda i, j: (j, i, 0))],
            out_specs=pl.BlockSpec((rt, 128), lambda i, j: (i, 0)),
            scratch_shapes=[pltpu.VMEM((rt, 128), jnp.float32)],
        ),
        compiler_params=pltpu.CompilerParams(
            dimension_semantics=("parallel", "arbitrary"),
            vmem_limit_bytes=vmem_limit,
        ),
        cost_estimate=cost,
    )(x3d)


def _ssparse_flat(x2d, *, vmem_budget, vmem_limit, min_steps):
    """x2d: (B, N) with N not 128-aligned -> (1, N).  The partial last lane
    block is masked by Pallas, so there is no pre-kernel pad/slice copy."""
    B, N = x2d.shape
    isz = x2d.dtype.itemsize
    # Block's 2nd-minor dim must be a multiple of 8 or the full batch extent.
    bc = 8 if (B > 8 and B % 8 == 0) else B
    nb = B // bc
    # VMEM buffers are (8,128)-tiled: count padded sublanes in the budget.
    per_lane = 2 * _round_up(bc, 8) * isz + 2 * 8 * isz + 8 * 4
    lt = _pick_tile(N, per_lane, vmem_budget, min_steps, 128)
    gi = pl.cdiv(N, lt)

    cost = pl.CostEstimate(
        flops=B * N,
        transcendentals=0,
        bytes_accessed=(B + 1) * N * isz,
    )

    return pl.pallas_call(
        _ssparse_kernel,
        out_shape=jax.ShapeDtypeStruct((1, N), x2d.dtype),
        grid_spec=pltpu.PrefetchScalarGridSpec(
            num_scalar_prefetch=0,
            grid=(gi, nb),
            in_specs=[pl.BlockSpec((bc, lt), lambda i, j: (j, i))],
            out_specs=pl.BlockSpec((1, lt), lambda i, j: (0, i)),
            scratch_shapes=[pltpu.VMEM((1, lt), jnp.float32)],
        ),
        compiler_params=pltpu.CompilerParams(
            dimension_semantics=("parallel", "arbitrary"),
            vmem_limit_bytes=vmem_limit,
        ),
        cost_estimate=cost,
    )(x2d)


def ssparse_forward(x):
    """x: (B, ...) -> threshold(sum(x, axis=0), 100) with shape x.shape[1:]."""
    B = x.shape[0]
    out_shape = x.shape[1:]
    N = 1
    for d in out_shape:
        N *= int(d)

    params = _gen_params()
    x2d = x.reshape(B, N)                        # free view for contiguous input
    if N > 0 and N % 128 == 0:
        rows = N // 128
        out = _ssparse_rows128(x2d.reshape(B, rows, 128), **params)
    else:
        out = _ssparse_flat(x2d, **params)
    return out.reshape(out_shape)


if __name__ == "__main__":
    # 128-aligned conv-style input (exercises the dense (B, rows, 128) path).
    B, C, H, W = 2, 4, 16, 16
    x = jax.random.uniform(jax.random.PRNGKey(0), (B, C, H, W), dtype=jnp.float32) * 120.0
    out = jax.block_until_ready(ssparse_forward(x))
    ref = jnp.sum(x, axis=0)
    ref = jnp.where(ref < K_THRESHOLD, 0.0, ref)
    assert out.shape == (C, H, W)
    assert jnp.allclose(out, ref, atol=1e-5), "aligned-path mismatch vs reference"

    # Non-128-aligned shape (exercises the masked flat path: no extra copies).
    x2 = jax.random.uniform(jax.random.PRNGKey(1), (3, 5, 7), dtype=jnp.float32) * 80.0
    out2 = jax.block_until_ready(ssparse_forward(x2))
    ref2 = jnp.sum(x2, axis=0)
    ref2 = jnp.where(ref2 < K_THRESHOLD, 0.0, ref2)
    assert out2.shape == (5, 7)
    assert jnp.allclose(out2, ref2, atol=1e-5), "flat-path mismatch vs reference"

    print("KERNEL_OK")
</pallas_src>

<mosaic_0001>
module attributes {stable_mosaic.version = 11 : i64} {
  func.func @_ssparse_kernel(%arg0: i32, %arg1: i32, %arg2: memref<2x8x128xf32, #tpu.memory_space<vmem>>, %arg3: memref<8x128xf32, #tpu.memory_space<vmem>>, %arg4: memref<8x128xf32, #tpu.memory_space<vmem>>) attributes {dimension_semantics = [#tpu.dimension_semantics<parallel>, #tpu.dimension_semantics<arbitrary>], iteration_bounds = array<i64: 1, 1>, scalar_prefetch = 0 : i64, scratch_operands = 1 : i64, tpu.core_type = #tpu.core_type<tc>, window_params = [{transform_indices = @transform_0, window_bounds = array<i64: 2, 8, 128>}, {transform_indices = @transform_1, window_bounds = array<i64: 8, 128>}]} {
    %c0_i32 = arith.constant 0 : i32
    %0 = arith.cmpi eq, %arg1, %c0_i32 : i32
    %1 = arith.extui %0 : i1 to i32
    %c0_i32_0 = arith.constant 0 : i32
    %2 = arith.cmpi ne, %1, %c0_i32_0 : i32
    scf.if %2 {
      %cst_9 = arith.constant 0.000000e+00 : f32
      %11 = vector.broadcast %cst_9 : f32 to vector<8x128xf32>
      %c0_10 = arith.constant 0 : index
      %c0_11 = arith.constant 0 : index
      %12 = vector.load %arg4[%c0_10, %c0_11] : memref<8x128xf32, #tpu.memory_space<vmem>>, vector<8x128xf32>
      tpu.vector_store %arg4[%c0_10, %c0_11], %11 {strides = array<i32>} : memref<8x128xf32, #tpu.memory_space<vmem>>, vector<8x128xf32>,
    } else {
    }
    %c0 = arith.constant 0 : index
    %c0_1 = arith.constant 0 : index
    %c0_2 = arith.constant 0 : index
    %3 = vector.load %arg2[%c0, %c0_1, %c0_2] : memref<2x8x128xf32, #tpu.memory_space<vmem>>, vector<2x8x128xf32>
    %c0_3 = arith.constant 0 : index
    %c0_4 = arith.constant 0 : index
    %4 = vector.load %arg4[%c0_3, %c0_4] : memref<8x128xf32, #tpu.memory_space<vmem>>, vector<8x128xf32>
    %cst = arith.constant dense<0.000000e+00> : vector<8x128xf32>
    %5 = vector.multi_reduction <add>, %3, %cst [0] : vector<2x8x128xf32> to vector<8x128xf32>
    %6 = arith.addf %4, %5 : vector<8x128xf32>
    %c0_5 = arith.constant 0 : index
    %c0_6 = arith.constant 0 : index
    %7 = vector.load %arg4[%c0_5, %c0_6] : memref<8x128xf32, #tpu.memory_space<vmem>>, vector<8x128xf32>
    tpu.vector_store %arg4[%c0_5, %c0_6], %6 {strides = array<i32>} : memref<8x128xf32, #tpu.memory_space<vmem>>, vector<8x128xf32>,
    %c0_i32_7 = arith.constant 0 : i32
    %8 = arith.cmpi eq, %arg1, %c0_i32_7 : i32
    %9 = arith.extui %8 : i1 to i32
    %c0_i32_8 = arith.constant 0 : i32
    %10 = arith.cmpi ne, %9, %c0_i32_8 : i32
    scf.if %10 {
      %c0_9 = arith.constant 0 : index
      %c0_10 = arith.constant 0 : index
      %11 = vector.load %arg4[%c0_9, %c0_10] : memref<8x128xf32, #tpu.memory_space<vmem>>, vector<8x128xf32>
      %cst_11 = arith.constant 1.000000e+02 : f32
      %12 = vector.broadcast %cst_11 : f32 to vector<8x128xf32>
      %13 = arith.cmpf olt, %11, %12 : vector<8x128xf32>
      %cst_12 = arith.constant 0.000000e+00 : f32
      %14 = vector.broadcast %cst_12 : f32 to vector<8x128xf32>
      %15 = arith.select %13, %14, %11 : vector<8x128xi1>, vector<8x128xf32>
      %c0_13 = arith.constant 0 : index
      %c0_14 = arith.constant 0 : index
      %16 = vector.load %arg3[%c0_13, %c0_14] : memref<8x128xf32, #tpu.memory_space<vmem>>, vector<8x128xf32>
      tpu.vector_store %arg3[%c0_13, %c0_14], %15 {strides = array<i32>} : memref<8x128xf32, #tpu.memory_space<vmem>>, vector<8x128xf32>,
    } else {
    }
    return
  }
  func.func @transform_0(%arg0: i32, %arg1: i32) -> (i32, i32, i32) {
    %c0_i32 = arith.constant 0 : i32
    %c0_i32_0 = arith.constant 0 : i32
    return %arg1, %arg0, %c0_i32 : i32, i32, i32
  }
  func.func @transform_1(%arg0: i32, %arg1: i32) -> (i32, i32) {
    %c0_i32 = arith.constant 0 : i32
    %c0_i32_0 = arith.constant 0 : i32
    return %arg0, %c0_i32 : i32, i32
  }
}

</mosaic_0001>

<bundles_post_ra>
// kernel: tpu_custom_call.1
= control target key start
LH: loop header
LB: loop body
LE: loop exit
PB: predicated region body
PF: predicated region fallthrough
CT: control target
= control target key end

     0   :  { %6 = vsyncpa [#allocation4], 0  ;;  %s146_s0 = inlined_call_operand.hbm [shape: f32[2,8,128], index: 0, kind: input, shape index: {}]   ;;  %s147_s1 = inlined_call_operand.hbm [shape: f32[8,128], index: 1, kind: output, shape index: {}]  }
   0x1   :  { %7 = vsyncpa [#allocation5], 0  ;;  %s108_s6 = smov [#allocation3]   ;;  %s60_s10 = scalar_lea.hbm %s146_s0, 256 }
   0x2   :  { %s13_s7 = sshll.u32 %s108_s6, 4  ;;  %p61_p0 = scmp.ne.s32.totalorder %s146_s0, %s60_s10  ;;  %s14_s7 = int_to_ptr.vmem [resolvable:$true] %s13_s7 }
   0x3   :  { %p64_p1 = scmp.lt.u32.totalorder %s60_s10, %s146_s0 }
   0x5   :  { %p66_p2 = pnand %p64_p1, %p61_p0 }
   0x7   :  { %69 = shalt.err (!%p66_p2)
}
   0x8   :  { %s70_s15 = scalar_lea.vmem %s14_s7, 256  ;;  %p75_p4 = scmp.lt.s32.totalorder %s14_s7, %s14_s7 }
   0x9   :  { %p71_p3 = scmp.ne.s32.totalorder %s14_s7, %s70_s15  ;;  %p76_p5 = scmp.lt.s32.totalorder %s70_s15, %s70_s15 }
   0xb   :  { %p77_p6 = por %p76_p5, %p75_p4 }
   0xd   :  { %p78_p7 = pnand %p77_p6, %p71_p3 }
   0xf   :  { %81 = shalt.err (!%p78_p7)
}
  0x10   :  { %s109_s16 = smov 128   ;;  %s110_s17 = smov 8  }
  0x11   :  { %19 = dma.hbm_to_vmem [thread:$0]  %s146_s0, 256, %s14_s7, [#allocation4], %s109_s16, %s109_s16, %s110_s17  }
  0x12   :  { %104 = dma.done.wait [#allocation4], 256  }
  0x13   :  { %105 = vsyncadd [#allocation4], 4294967040  ;;  %v28_v0 = vld [vmem:[#allocation3] sm:$0xff]  ;;  %v29_v1 = vld [vmem:[#allocation3 + $0x8] sm:$0xff]  ;;  %s111_s20 = smov [#allocation6]  }
  0x14   :  { %s47_s21 = sshll.u32 %s111_s20, 4  ;;  %v31_v2 = vadd.f32 %v29_v1, %v28_v0  ;;  %s48_s21 = int_to_ptr.vmem [resolvable:$true] %s47_s21 }
  0x15   :  { %s82_s22 = scalar_lea.vmem %s48_s21, 128  ;;  %p87_p9 = scmp.lt.s32.totalorder %s48_s21, %s48_s21 }
  0x16   :  { %vm38_vm0 = vcmp.lt.f32.partialorder %v31_v2, 100.0  ;;  %p83_p8 = scmp.ne.s32.totalorder %s48_s21, %s82_s22  ;;  %p88_p10 = scmp.lt.s32.totalorder %s82_s22, %s82_s22 }
  0x17   :  { %v39_v3 = vsel %vm38_vm0, 0.0, %v31_v2 }
  0x18   :  { %40 = vst [vmem:[#allocation6] sm:$0xff] %v39_v3  ;;  %p89_p11 = por %p88_p10, %p87_p9 }
  0x1a   :  { %p90_p12 = pnand %p89_p11, %p83_p8 }
  0x1c   :  { %93 = shalt.err (!%p90_p12)
}
  0x1d   :  { %s94_s24 = scalar_lea.hbm %s147_s1, 128 }
  0x1e   :  { %p95_p13 = scmp.ne.s32.totalorder %s147_s1, %s94_s24  ;;  %p98_p0 = scmp.lt.u32.totalorder %s94_s24, %s147_s1 }
  0x20   :  { %p100_p1 = pnand %p98_p0, %p95_p13 }
  0x22   :  { %103 = shalt.err (!%p100_p1)
}
  0x23   :  { %50 = dma.vmem_to_hbm [thread:$0]  %s48_s21, 128, %s147_s1, [#allocation5]  }
  0x24   :  { %106 = dma.done.wait [#allocation5], 128  }
  0x25   :  { %107 = vsyncadd [#allocation5], 4294967168 }
  0x26   :  { %54 = vsyncpa [#allocation4], 1 }
  0x27   :  { %55 = vsyncpa [#allocation5], 1 }

</bundles_post_ra>
